<compile_context>
chip_gen: v5e
topology: v5e:2x2
jax: 0.10.0
libtpu: 0.0.40
codegen_flags: <defaults>
</compile_context>

<pallas_src>
import functools

import jax
import jax.numpy as jnp
from jax.experimental import pallas as pl
from jax.experimental.pallas import tpu as pltpu


def _round_up(x, m):
    return ((x + m - 1) // m) * m


def _qnet_kernel(x_ref,
                 w0_ref, b0_ref,
                 w1_ref, b1_ref,
                 w2_ref, b2_ref,
                 q_ref, asum_ref,
                 *, batch, tile_b):
    x = x_ref[...].astype(jnp.bfloat16)                               # (TB, S)

    # Shared feature layer (bf16 MXU, f32 accumulate).
    h = jnp.dot(x, w0_ref[...], preferred_element_type=jnp.float32) + b0_ref[...]
    h = jnp.maximum(h, 0.0)                                           # (TB, h0)

    # Fused value|advantage hidden layer: one 128-lane matmul + ReLU.
    hva = jnp.dot(h.astype(jnp.bfloat16), w1_ref[...],
                  preferred_element_type=jnp.float32) + b1_ref[...]
    hva = jnp.maximum(hva, 0.0)                                       # (TB, 2*h1)

    # Fused block-diagonal output heads (8-lane padded):
    #   col 0 = v, cols 1..A = a, remaining cols are exactly 0.
    slab = jnp.dot(hva.astype(jnp.bfloat16), w2_ref[...],
                   preferred_element_type=jnp.float32) + b2_ref[...]  # (TB, npad)

    v = slab[:, 0:1]                                                  # (TB, 1)
    # cols 1..A hold v + a (col 0 / padding sliced off in wrapper).
    q_ref[...] = v + slab

    # Per-tile partial sum of the advantage entries (for the global mean).
    # Padding lanes are structurally zero, so only mask OOB rows and lane 0.
    row = jax.lax.broadcasted_iota(jnp.int32, (tile_b, 1), 0)
    valid_row = (pl.program_id(0) * tile_b + row) < batch             # mask padded rows
    masked = jnp.where(valid_row, slab, 0.0)                          # (TB, npad)
    asum_ref[0, 0] = jnp.sum(masked) - jnp.sum(masked[:, 0:1])        # scalar -> SMEM


def qnet_forward(state, fused, action_size, tile_b=2048):
    """state: (B, state_size) f32. fused: dict from fuse_params()."""
    batch, state_size = state.shape
    h0 = fused["w0"].shape[1]          # feature width (64)
    hcat = fused["w1"].shape[1]        # fused stream width (128)
    npad = fused["w2"].shape[1]        # padded head width (>= 1+A, multiple of 8)

    # Keep the batch grid at >= 2 steps when batch allows it so both v7x
    # TensorCores get work; round tiles to the 8-row sublane granule.
    tb = min(tile_b, max(8, _round_up(pl.cdiv(batch, 2), 8)))
    n_tiles = pl.cdiv(batch, tb)

    kernel = functools.partial(_qnet_kernel, batch=batch, tile_b=tb)

    q_pad, a_part = pl.pallas_call(
        kernel,
        out_shape=(
            jax.ShapeDtypeStruct((batch, npad), jnp.float32),          # v + a slab
            jax.ShapeDtypeStruct((n_tiles, 1), jnp.float32),           # per-tile sum(a)
        ),
        grid=(n_tiles,),
        in_specs=[
            pl.BlockSpec((tb, state_size), lambda i: (i, 0)),          # batch-tiled input
            # Weights/biases: constant index maps -> resident in VMEM, not re-DMA'd.
            pl.BlockSpec((state_size, h0), lambda i: (0, 0)),
            pl.BlockSpec((1, h0), lambda i: (0, 0)),
            pl.BlockSpec((h0, hcat), lambda i: (0, 0)),
            pl.BlockSpec((1, hcat), lambda i: (0, 0)),
            pl.BlockSpec((hcat, npad), lambda i: (0, 0)),
            pl.BlockSpec((1, npad), lambda i: (0, 0)),
        ],
        out_specs=(
            pl.BlockSpec((tb, npad), lambda i: (i, 0)),
            pl.BlockSpec((1, 1), lambda i: (i, 0),
                         memory_space=pltpu.MemorySpace.SMEM),
        ),
        compiler_params=pltpu.CompilerParams(
            dimension_semantics=("parallel",)),                        # megacore on v7x
    )(state, fused["w0"], fused["b0"], fused["w1"], fused["b1"],
      fused["w2"], fused["b2"])

    # Finalize the global mean(a): the reduction spans the whole batch, so the
    # tiny cross-tile reduce happens here (keeps the batch grid fully parallel).
    mean_a = jnp.sum(a_part) / (batch * action_size)
    return q_pad[:, 1:1 + action_size] - mean_a


def init_params(key, state_size, action_size, hidden_layers=(64, 64)):
    """PyTorch-style uniform(-1/sqrt(fan_in), 1/sqrt(fan_in)) init.

    Linear weights stored as (in_features, out_features); biases as (1, out).
    """
    h0, h1 = hidden_layers

    def linear(key, fan_in, fan_out):
        kw, kb = jax.random.split(key)
        bound = 1.0 / jnp.sqrt(float(fan_in))
        w = jax.random.uniform(kw, (fan_in, fan_out), jnp.float32, -bound, bound)
        b = jax.random.uniform(kb, (1, fan_out), jnp.float32, -bound, bound)
        return w, b

    keys = jax.random.split(key, 5)
    w0, b0 = linear(keys[0], state_size, h0)          # feature fc0
    wv1, bv1 = linear(keys[1], h0, h1)                # value stream hidden
    wv2, bv2 = linear(keys[2], h1, 1)                 # value stream output
    wa1, ba1 = linear(keys[3], h0, h1)                # advantage stream hidden
    wa2, ba2 = linear(keys[4], h1, action_size)       # advantage stream output
    return dict(w0=w0, b0=b0, wv1=wv1, bv1=bv1, wv2=wv2, bv2=bv2,
                wa1=wa1, ba1=ba1, wa2=wa2, ba2=ba2)


def fuse_params(p, action_size):
    """Fuse the dueling streams into lane-dense, bf16 weights (once, outside the kernel).

    w1 = [Wv1 | Wa1]  -> (h0, 2*h1) = (64, 128)
    w2 = block-diag([Wv2, Wa2]) padded to npad = max(8, round_up(1+A, 8)) lanes:
         col 0 = value head, cols 1..A = advantage head, remaining cols = 0.
    Weights are stored bf16 (MXU-native); biases stay f32 (added to f32 accumulators).
    """
    h1 = p["wv1"].shape[1]
    npad = max(8, _round_up(1 + action_size, 8))

    w1 = jnp.concatenate([p["wv1"], p["wa1"]], axis=1)
    b1 = jnp.concatenate([p["bv1"], p["ba1"]], axis=1)

    w2 = jnp.zeros((2 * h1, npad), jnp.float32)
    w2 = w2.at[:h1, 0:1].set(p["wv2"])
    w2 = w2.at[h1:, 1:1 + action_size].set(p["wa2"])
    b2 = jnp.zeros((1, npad), jnp.float32)
    b2 = b2.at[:, 0:1].set(p["bv2"])
    b2 = b2.at[:, 1:1 + action_size].set(p["ba2"])

    return dict(w0=p["w0"].astype(jnp.bfloat16), b0=p["b0"],
                w1=w1.astype(jnp.bfloat16), b1=b1,
                w2=w2.astype(jnp.bfloat16), b2=b2)


def qnet_reference(state, p):
    """Pure-JAX f32 reference matching the PyTorch forward semantics (unfused params)."""
    h = jax.nn.relu(state @ p["w0"] + p["b0"])
    v = jax.nn.relu(h @ p["wv1"] + p["bv1"]) @ p["wv2"] + p["bv2"]
    a = jax.nn.relu(h @ p["wa1"] + p["ba1"]) @ p["wa2"] + p["ba2"]
    return v + a - jnp.mean(a)


if __name__ == "__main__":
    batch = 2
    state_size = 8
    action_size = 4

    key = jax.random.PRNGKey(0)
    k_params, k_state = jax.random.split(key)
    raw = init_params(k_params, state_size, action_size)
    fused = fuse_params(raw, action_size)
    state = jax.random.normal(k_state, (batch, state_size), dtype=jnp.float32)

    out = jax.block_until_ready(qnet_forward(state, fused, action_size))
    ref = jax.block_until_ready(qnet_reference(state, raw))

    assert out.shape == (batch, action_size)
    # Kernel runs bf16 matmuls (f32 accumulate) against an f32 reference,
    # so allow bf16-level tolerance.
    assert jnp.allclose(out, ref, atol=3e-2, rtol=3e-2), (out, ref)
    print("KERNEL_OK")
</pallas_src>

<mosaic_0001>
module attributes {stable_mosaic.version = 11 : i64} {
  func.func @_qnet_kernel(%arg0: i32, %arg1: memref<8x8xf32, #tpu.memory_space<vmem>>, %arg2: memref<8x64xbf16, #tpu.memory_space<vmem>>, %arg3: memref<1x64xf32, #tpu.memory_space<vmem>>, %arg4: memref<64x128xbf16, #tpu.memory_space<vmem>>, %arg5: memref<1x128xf32, #tpu.memory_space<vmem>>, %arg6: memref<128x8xbf16, #tpu.memory_space<vmem>>, %arg7: memref<1x8xf32, #tpu.memory_space<vmem>>, %arg8: memref<8x8xf32, #tpu.memory_space<vmem>>, %arg9: memref<1x1xf32, #tpu.memory_space<smem>>) attributes {dimension_semantics = [#tpu.dimension_semantics<parallel>], iteration_bounds = array<i64: 1>, scalar_prefetch = 0 : i64, scratch_operands = 0 : i64, tpu.core_type = #tpu.core_type<tc>, window_params = [{transform_indices = @transform_0, window_bounds = array<i64: 8, 8>}, {pipeline_mode = #tpu.pipeline_mode<synchronous>, transform_indices = @transform_1, window_bounds = array<i64: 8, 64>}, {pipeline_mode = #tpu.pipeline_mode<synchronous>, transform_indices = @transform_2, window_bounds = array<i64: 1, 64>}, {pipeline_mode = #tpu.pipeline_mode<synchronous>, transform_indices = @transform_3, window_bounds = array<i64: 64, 128>}, {pipeline_mode = #tpu.pipeline_mode<synchronous>, transform_indices = @transform_4, window_bounds = array<i64: 1, 128>}, {pipeline_mode = #tpu.pipeline_mode<synchronous>, transform_indices = @transform_5, window_bounds = array<i64: 128, 8>}, {pipeline_mode = #tpu.pipeline_mode<synchronous>, transform_indices = @transform_6, window_bounds = array<i64: 1, 8>}, {transform_indices = @transform_7, window_bounds = array<i64: 8, 8>}, {transform_indices = @transform_8, window_bounds = array<i64: 1, 1>}]} {
    %c0 = arith.constant 0 : index
    %c0_0 = arith.constant 0 : index
    %0 = vector.load %arg1[%c0, %c0_0] : memref<8x8xf32, #tpu.memory_space<vmem>>, vector<8x8xf32>
    %1 = arith.truncf %0 : vector<8x8xf32> to vector<8x8xbf16>
    %c0_1 = arith.constant 0 : index
    %c0_2 = arith.constant 0 : index
    %2 = vector.load %arg2[%c0_1, %c0_2] : memref<8x64xbf16, #tpu.memory_space<vmem>>, vector<8x64xbf16>
    %cst = arith.constant dense<0.000000e+00> : vector<8x64xf32>
    %3 = tpu.matmul %1, %2, %cst {dimension_numbers = #tpu.dot_dimension_numbers<[1], [0], [0], [1], [0, 0, 1, 1], [], []>} : vector<8x8xbf16>, vector<8x64xbf16>, vector<8x64xf32> -> vector<8x64xf32>
    %c0_3 = arith.constant 0 : index
    %c0_4 = arith.constant 0 : index
    %4 = vector.load %arg3[%c0_3, %c0_4] : memref<1x64xf32, #tpu.memory_space<vmem>>, vector<1x64xf32>
    %5 = vector.broadcast %4 : vector<1x64xf32> to vector<8x64xf32>
    %6 = arith.addf %3, %5 : vector<8x64xf32>
    %cst_5 = arith.constant 0.000000e+00 : f32
    %7 = vector.broadcast %cst_5 : f32 to vector<8x64xf32>
    %8 = arith.maximumf %6, %7 : vector<8x64xf32>
    %9 = arith.truncf %8 : vector<8x64xf32> to vector<8x64xbf16>
    %c0_6 = arith.constant 0 : index
    %c0_7 = arith.constant 0 : index
    %10 = vector.load %arg4[%c0_6, %c0_7] : memref<64x128xbf16, #tpu.memory_space<vmem>>, vector<64x128xbf16>
    %cst_8 = arith.constant dense<0.000000e+00> : vector<8x128xf32>
    %11 = tpu.matmul %9, %10, %cst_8 {dimension_numbers = #tpu.dot_dimension_numbers<[1], [0], [0], [1], [0, 0, 1, 1], [], []>} : vector<8x64xbf16>, vector<64x128xbf16>, vector<8x128xf32> -> vector<8x128xf32>
    %c0_9 = arith.constant 0 : index
    %c0_10 = arith.constant 0 : index
    %12 = vector.load %arg5[%c0_9, %c0_10] : memref<1x128xf32, #tpu.memory_space<vmem>>, vector<1x128xf32>
    %13 = vector.broadcast %12 : vector<1x128xf32> to vector<8x128xf32>
    %14 = arith.addf %11, %13 : vector<8x128xf32>
    %cst_11 = arith.constant 0.000000e+00 : f32
    %15 = vector.broadcast %cst_11 : f32 to vector<8x128xf32>
    %16 = arith.maximumf %14, %15 : vector<8x128xf32>
    %17 = arith.truncf %16 : vector<8x128xf32> to vector<8x128xbf16>
    %c0_12 = arith.constant 0 : index
    %c0_13 = arith.constant 0 : index
    %18 = vector.load %arg6[%c0_12, %c0_13] : memref<128x8xbf16, #tpu.memory_space<vmem>>, vector<128x8xbf16>
    %cst_14 = arith.constant dense<0.000000e+00> : vector<8x8xf32>
    %19 = tpu.matmul %17, %18, %cst_14 {dimension_numbers = #tpu.dot_dimension_numbers<[1], [0], [0], [1], [0, 0, 1, 1], [], []>} : vector<8x128xbf16>, vector<128x8xbf16>, vector<8x8xf32> -> vector<8x8xf32>
    %c0_15 = arith.constant 0 : index
    %c0_16 = arith.constant 0 : index
    %20 = vector.load %arg7[%c0_15, %c0_16] : memref<1x8xf32, #tpu.memory_space<vmem>>, vector<1x8xf32>
    %21 = vector.broadcast %20 : vector<1x8xf32> to vector<8x8xf32>
    %22 = arith.addf %19, %21 : vector<8x8xf32>
    %23 = vector.extract_strided_slice %22 {offsets = [0, 0], sizes = [8, 1], strides = [1, 1]} : vector<8x8xf32> to vector<8x1xf32>
    %24 = vector.broadcast %23 : vector<8x1xf32> to vector<8x8xf32>
    %25 = arith.addf %24, %22 : vector<8x8xf32>
    %c0_17 = arith.constant 0 : index
    %c0_18 = arith.constant 0 : index
    %26 = vector.load %arg8[%c0_17, %c0_18] : memref<8x8xf32, #tpu.memory_space<vmem>>, vector<8x8xf32>
    tpu.vector_store %arg8[%c0_17, %c0_18], %25 {strides = array<i32>} : memref<8x8xf32, #tpu.memory_space<vmem>>, vector<8x8xf32>,
    %27 = tpu.iota {dimensions = array<i32: 0>} : vector<8x1xi32>
    %c8_i32 = arith.constant 8 : i32
    %28 = arith.muli %arg0, %c8_i32 : i32
    %29 = vector.broadcast %28 : i32 to vector<8x1xi32>
    %30 = arith.addi %29, %27 : vector<8x1xi32>
    %c2_i32 = arith.constant 2 : i32
    %31 = vector.broadcast %c2_i32 : i32 to vector<8x1xi32>
    %32 = arith.cmpi slt, %30, %31 : vector<8x1xi32>
    %cst_19 = arith.constant 0.000000e+00 : f32
    %33 = vector.shape_cast %32 : vector<8x1xi1> to vector<8x1xi1>
    %34 = vector.broadcast %33 : vector<8x1xi1> to vector<8x8xi1>
    %35 = vector.broadcast %cst_19 : f32 to vector<8x8xf32>
    %36 = arith.select %34, %22, %35 : vector<8x8xi1>, vector<8x8xf32>
    %37 = vector.shape_cast %36 : vector<8x8xf32> to vector<1x8x8xf32>
    %cst_20 = arith.constant dense<0.000000e+00> : vector<1xf32>
    %38 = vector.multi_reduction <add>, %37, %cst_20 [1, 2] : vector<1x8x8xf32> to vector<1xf32>
    %39 = vector.shape_cast %38 : vector<1xf32> to vector<1x1x1xf32>
    %40 = vector.extract %39[0, 0, 0] : f32 from vector<1x1x1xf32>
    %41 = vector.extract_strided_slice %36 {offsets = [0, 0], sizes = [8, 1], strides = [1, 1]} : vector<8x8xf32> to vector<8x1xf32>
    %42 = vector.shape_cast %41 : vector<8x1xf32> to vector<1x8x1xf32>
    %cst_21 = arith.constant dense<0.000000e+00> : vector<1xf32>
    %43 = vector.multi_reduction <add>, %42, %cst_21 [1, 2] : vector<1x8x1xf32> to vector<1xf32>
    %44 = vector.shape_cast %43 : vector<1xf32> to vector<1x1x1xf32>
    %45 = vector.extract %44[0, 0, 0] : f32 from vector<1x1x1xf32>
    %46 = arith.subf %40, %45 : f32
    %c0_22 = arith.constant 0 : index
    %c0_23 = arith.constant 0 : index
    %47 = memref.load %arg9[%c0_22, %c0_23] : memref<1x1xf32, #tpu.memory_space<smem>>
    memref.store %46, %arg9[%c0_22, %c0_23] : memref<1x1xf32, #tpu.memory_space<smem>>
    return
  }
  func.func @transform_0(%arg0: i32) -> (i32, i32) {
    %c0_i32 = arith.constant 0 : i32
    %c0_i32_0 = arith.constant 0 : i32
    return %arg0, %c0_i32 : i32, i32
  }
  func.func @transform_1(%arg0: i32) -> (i32, i32) {
    %c0_i32 = arith.constant 0 : i32
    %c0_i32_0 = arith.constant 0 : i32
    %c0_i32_1 = arith.constant 0 : i32
    return %c0_i32, %c0_i32_0 : i32, i32
  }
  func.func @transform_2(%arg0: i32) -> (i32, i32) {
    %c0_i32 = arith.constant 0 : i32
    %c0_i32_0 = arith.constant 0 : i32
    %c0_i32_1 = arith.constant 0 : i32
    return %c0_i32, %c0_i32_0 : i32, i32
  }
  func.func @transform_3(%arg0: i32) -> (i32, i32) {
    %c0_i32 = arith.constant 0 : i32
    %c0_i32_0 = arith.constant 0 : i32
    %c0_i32_1 = arith.constant 0 : i32
    return %c0_i32, %c0_i32_0 : i32, i32
  }
  func.func @transform_4(%arg0: i32) -> (i32, i32) {
    %c0_i32 = arith.constant 0 : i32
    %c0_i32_0 = arith.constant 0 : i32
    %c0_i32_1 = arith.constant 0 : i32
    return %c0_i32, %c0_i32_0 : i32, i32
  }
  func.func @transform_5(%arg0: i32) -> (i32, i32) {
    %c0_i32 = arith.constant 0 : i32
    %c0_i32_0 = arith.constant 0 : i32
    %c0_i32_1 = arith.constant 0 : i32
    return %c0_i32, %c0_i32_0 : i32, i32
  }
  func.func @transform_6(%arg0: i32) -> (i32, i32) {
    %c0_i32 = arith.constant 0 : i32
    %c0_i32_0 = arith.constant 0 : i32
    %c0_i32_1 = arith.constant 0 : i32
    return %c0_i32, %c0_i32_0 : i32, i32
  }
  func.func @transform_7(%arg0: i32) -> (i32, i32) {
    %c0_i32 = arith.constant 0 : i32
    %c0_i32_0 = arith.constant 0 : i32
    return %arg0, %c0_i32 : i32, i32
  }
  func.func @transform_8(%arg0: i32) -> (i32, i32) {
    %c0_i32 = arith.constant 0 : i32
    %c0_i32_0 = arith.constant 0 : i32
    return %arg0, %c0_i32 : i32, i32
  }
}

</mosaic_0001>

<bundles_post_ra>
// kernel: tpu_custom_call.1
= control target key start
LH: loop header
LB: loop body
LE: loop exit
PB: predicated region body
PF: predicated region fallthrough
CT: control target
= control target key end

     0   :  { %14 = vsyncpa [#allocation3], 0  ;;  %s496_s0 = inlined_call_operand.vmem [shape: f32[2,8], index: 0, kind: input, shape index: {}]   ;;  %s497_s1 = inlined_call_operand.vmem [shape: bf16[8,64], index: 1, kind: input, shape index: {}]   ;;  %s498_s2 = inlined_call_operand.vmem [shape: f32[1,64], index: 2, kind: input, shape index: {}]   ;;  %s499_s3 = inlined_call_operand.vmem [shape: bf16[64,128], index: 3, kind: input, shape index: {}]   ;;  %s500_s4 = inlined_call_operand.vmem [shape: f32[1,128], index: 4, kind: input, shape index: {}]   ;;  %s501_s5 = inlined_call_operand.vmem [shape: bf16[128,8], index: 5, kind: input, shape index: {}]   ;;  %s502_s6 = inlined_call_operand.vmem [shape: f32[1,8], index: 6, kind: input, shape index: {}]   ;;  %s503_s7 = inlined_call_operand.hbm [shape: f32[2,8], index: 7, kind: output, shape index: {0}]   ;;  %s504_s8 = inlined_call_operand.hbm [shape: f32[1,1], index: 8, kind: output, shape index: {1}]  }
   0x1   :  { %15 = vsyncpa [#allocation4], 0  ;;  %v33_v0 = vld [vmem:[%s497_s1] sm:$0xf]  ;;  %vm42_vm0 = vcmask 1043456   ;;  %v323_v4 = vld [vmem:[%s499_s3 + $0x18] sm:$0xff]  ;;  %v204_v29 = vlaneseq }
   0x2   :  { %v31_v1 = vld [vmem:[%s496_s0] sm:$0xff]  ;;  %v44_v2 = vsel %vm42_vm0, %v33_v0, 0  ;;  %vm38_vm1 = vcmask 64512   ;;  %105 = vmatpush.bf16.msra.mxu1 %v323_v4  ;;  %v322_v5 = vld [vmem:[%s499_s3 + $0x10] sm:$0xff]  ;;  %v321_v6 = vld [vmem:[%s499_s3 + $0x8] sm:$0xff]  ;;  %vm97_vm2 = vcmask 523264  }
   0x3   :  { %v32_v3 = vpack.c.bf16 %v31_v1, %v31_v1  ;;  %53 = vmatpush.bf16.msra.mxu0 %v44_v2  ;;  %v320_v7 = vld [vmem:[%s499_s3] sm:$0xff]  ;;  %v331_v8 = vld [vmem:[%s501_s5 + $0x38] sm:$0xff]  ;;  %v330_v9 = vld [vmem:[%s501_s5 + $0x30] sm:$0xff]  ;;  %v386_v28 = vmov 0   ;;  %v205_v30 = vshrl.u32 %v204_v29, 7  ;;  %vm223_vm4 = vcmask 7168  }
   0x4   :  { %184 = vmatpush.bf16.msra.mxu2 %v331_v8  ;;  %v329_v10 = vld [vmem:[%s501_s5 + $0x28] sm:$0xff]  ;;  %v328_v11 = vld [vmem:[%s501_s5 + $0x20] sm:$0xff]  ;;  %v327_v12 = vld [vmem:[%s501_s5 + $0x18] sm:$0xff]  ;;  %341 = vset.pattern.permute.xlu1 %v386_v28 }
   0x5   :  { %v326_v13 = vld [vmem:[%s501_s5 + $0x10] sm:$0xff]  ;;  %v343_v14 = vld [vmem:[%s498_s2] ss:$0 sm:$0xff]  ;;  %v325_v20 = vld [vmem:[%s501_s5 + $0x8] sm:$0xff]  ;;  %342 = vset.pattern.permute.xlu0 %v386_v28  ;;  %vm209_vm3 = vcmp.lt.s32.totalorder %v205_v30, 2 }
   0x6   :  { %270 = vmatmul.msk.bf16.vlgmr.msra.gmra.mxu0 %vm38_vm1, %v32_v3  ;;  %106 = vmatpush.bf16.msra.mxu1 %v322_v5  ;;  %v324_v21 = vld [vmem:[%s501_s5] sm:$0xff] }
   0x7   :  { %v344_v22 = vld [vmem:[%s500_s4] ss:$0 sm:$0xff] }
   0x8   :  { %185 = vmatpush.bf16.msra.mxu2 %v330_v9  ;;  %v345_v31 = vld [vmem:[%s502_s6] ss:$0 sm:$0xff] }
   0xa   :  { %107 = vmatpush.bf16.msra.mxu1 %v321_v6 }
   0xc   :  { %186 = vmatpush.bf16.msra.mxu2 %v329_v10 }
   0xe   :  { %108 = vmatpush.bf16.msra.mxu1 %v320_v7 }
  0x10   :  { %187 = vmatpush.bf16.msra.mxu2 %v328_v11 }
  0x14   :  { %188 = vmatpush.bf16.msra.mxu2 %v327_v12 }
  0x18   :  { %189 = vmatpush.bf16.msra.mxu2 %v326_v13 }
  0x1c   :  { %190 = vmatpush.bf16.msra.mxu2 %v325_v20 }
  0x20   :  { %191 = vmatpush.bf16.msra.mxu2 %v324_v21 }
  0x83   :  { %v55_v15 = vpop.f32.mrf.mxu0 }
  0x84   :  { %v56_v16 = vadd.f32 %v343_v14, %v55_v15 }
  0x86   :  { %v59_v17 = vmax.f32 %v56_v16, 0.0 }
  0x88   :  { %v60_v18 = vpack.c.bf16 %v59_v17, %v59_v17 }
  0x8a   :  { %287 = vmatmul.msk.bf16.vlgmr.msra.gmra.mxu1 %vm97_vm2, %v60_v18 }
  0x8b   :  { %v57_v19 = vpop.f32.mrf.mxu0 }
 0x107   :  { %v110_v23 = vpop.f32.mrf.mxu1 }
 0x108   :  { %v111_v24 = vadd.f32 %v344_v22, %v110_v23 }
 0x10a   :  { %v114_v25 = vmax.f32 %v111_v24, 0.0 }
 0x10c   :  { %v115_v26 = vpack.c.bf16 %v114_v25, %v114_v25 }
 0x10e   :  { %192 = vmatmul.bf16.vlgmr.msra.gmra.mxu2 %v115_v26 }
 0x10f   :  { %v112_v27 = vpop.f32.mrf.mxu1 }
 0x191   :  { %v193_v32 = vpop.f32.mrf.mxu2 }
 0x192   :  { %v194_v33 = vadd.f32 %v345_v31, %v193_v32 }
 0x194   :  { %199 = vperm.xlu1 %341, %v194_v33   ;;  %v212_v34 = vsel %vm209_vm3, %v194_v33, 0.0 }
 0x195   :  { %v213_v35 = vsel %vm38_vm1, %v212_v34, 0.0  ;;  %v224_v37 = vsel %vm223_vm4, %v212_v34, 0.0 }
 0x196   :  { %214 = vadd.xlane.f32.xlu0 %v213_v35 }
 0x199   :  { %v195_v36 = vpop.f32.mrf.mxu2 }
 0x19e   :  { %225 = vadd.xlane.f32.xlu0 %v224_v37 }
 0x206   :  { %v200_v38 = vpop.permute.xlu1 %199 }
 0x207   :  { %v202_v39 = vadd.f32 %v200_v38, %v194_v33 }
 0x209   :  { %203 = vst.msk [vmem:[#allocation2] sm:$0xff] %vm38_vm1, %v202_v39  ;;  %v215_v40 = vpop.xlane.xlu0 %214 }
 0x20a   :  { %v216_v41 = vrot.slane %v215_v40, 4 }
 0x20c   :  { %v217_v42 = vadd.f32 %v216_v41, %v215_v40 }
 0x20e   :  { %v218_v43 = vrot.slane %v217_v42, 2 }
 0x210   :  { %v219_v44 = vadd.f32 %v218_v43, %v217_v42 }
 0x211   :  { %v226_v45 = vpop.xlane.xlu0 %225 }
 0x212   :  { %v227_v46 = vrot.slane %v226_v45, 4  ;;  %v220_v47 = vrot.slane %v219_v44, 1 }
 0x214   :  { %v228_v48 = vadd.f32 %v227_v46, %v226_v45  ;;  %v221_v49 = vadd.f32 %v220_v47, %v219_v44 }
 0x216   :  { %v229_v50 = vrot.slane %v228_v48, 2  ;;  %332 = vpush %v221_v49 }
 0x218   :  { %v230_v51 = vadd.f32 %v229_v50, %v228_v48 }
 0x21a   :  { %v231_v52 = vrot.slane %v230_v51, 1 }
 0x21c   :  { %v232_v53 = vadd.f32 %v231_v52, %v230_v51 }
 0x21e   :  { %334 = vpush %v232_v53 }
 0x247   :  { %s333_s4 = spop %332 }
 0x24f   :  { %s335_s5 = spop %334 }
 0x250   :  { %s234_s6 = ssub.f32 %s333_s4, %s335_s5 }
 0x252   :  { %236 = sst [smem:[#allocation5]] %s234_s6 }
 0x253   :  { %240 = vsyncadd [#allocation3], 96  ;;  %s243_s0 = sshll.u32 %s503_s7, 4  ;;  %s387_s14 = smov [#allocation2]   ;;  %s244_s0 = int_to_ptr.hbm [resolvable:$true] %s243_s0 }
 0x254   :  { %s241_s15 = sshll.u32 %s387_s14, 4  ;;  %s255_s18 = sshll.u32 %s504_s8, 4  ;;  %s242_s15 = int_to_ptr.vmem [resolvable:$true] %s241_s15  ;;  %s256_s18 = int_to_ptr.hbm [resolvable:$true] %s255_s18 }
 0x255   :  { %s388_s19 = smov 32   ;;  %s389_s20 = smov 2  }
 0x256   :  { %249 = dma.vmem_to_hbm [thread:$0]  %s242_s15, 32, %s244_s0, [#allocation3], %s388_s19, %s388_s19, %s389_s20  }
 0x257   :  { %s390_s21 = smov [#allocation5]  }
 0x258   :  { %258 = dma.smem_to_hbm %s390_s21, 16, %s256_s18, [#allocation4]  }
 0x259   :  { %382 = dma.done.wait [#allocation3], 128  }
 0x25a   :  { %383 = vsyncadd [#allocation3], 4294967168 }
 0x25b   :  { %384 = dma.done.wait [#allocation4], 16  }
 0x25c   :  { %385 = vsyncadd [#allocation4], 4294967280 }
 0x25d   :  { %267 = sfence }
 0x25e   :  { %268 = vsyncpa [#allocation3], 1 }
 0x25f   :  { %269 = vsyncpa [#allocation4], 1 }

</bundles_post_ra>
